<compile_context>
chip_gen: v5e
topology: v5e:2x2
jax: 0.10.0
libtpu: 0.0.40
codegen_flags: <defaults>
</compile_context>

<pallas_src>
import functools

import jax
import jax.numpy as jnp
from jax import lax
from jax.experimental import pallas as pl
from jax.experimental.pallas import tpu as pltpu

_COS_EPS = 1e-8  # torch.nn.functional.cosine_similarity default eps


def _contrastive_unlearn_kernel(lf_ref, hf_ref, hr_ref, lr_ref, out_ref,
                                dots_acc, w1_acc, w2_acc, *, eps, batch_size):
    k = pl.program_id(0)
    nk = pl.num_programs(0)

    @pl.when(k == 0)
    def _():
        dots_acc[...] = jnp.zeros_like(dots_acc)
        w1_acc[...] = jnp.zeros_like(w1_acc)
        w2_acc[...] = jnp.zeros_like(w2_acc)

    hf = hf_ref[...]                              # (1, tk)   row B-1 of h_f, native dtype
    hr = hr_ref[...]                              # (B_r, tk) native dtype

    # MXU: (1, tk) . (B_r, tk)^T -> (1, B_r) partial dot row, f32 accumulate.
    dots_acc[...] += lax.dot_general(
        hf, hr, (((1,), (1,)), ((), ())),
        precision=lax.Precision.HIGHEST,
        preferred_element_type=jnp.float32)

    hf32 = hf.astype(jnp.float32)
    hr32 = hr.astype(jnp.float32)
    w1_acc[...] += jnp.sum(hf32 * hf32, axis=1, keepdims=True)            # (1, 1)

    # Per-column |h_r|^2 directly in lane layout: ones(1,tk) . (hr^2)^T -> (1, B_r).
    ones_row = jnp.ones((1, hr.shape[1]), jnp.float32)
    w2_acc[...] += lax.dot_general(
        ones_row, hr32 * hr32, (((1,), (1,)), ((), ())),
        precision=lax.Precision.HIGHEST,
        preferred_element_type=jnp.float32)                               # (1, B_r)

    # Epilogue only on the last feature slab.
    @pl.when(k == nk - 1)
    def _():
        lf = lf_ref[0]                            # int32 scalar in SMEM: labels_f[B-1]
        lr = lr_ref[...]                          # (1, B_r) int32
        dots = dots_acc[...]
        w1 = w1_acc[...]
        w2 = w2_acc[...]

        # cosine sim row i = B-1: dot / sqrt(max(|hf|^2 |hr|^2, eps^2)), EUP rsqrt.
        inv_denom = lax.rsqrt(jnp.maximum(w1 * w2, _COS_EPS * _COS_EPS))
        row = dots * inv_denom                    # (1, B_r)

        p_row = lr == lf                          # (1, B_r)
        n_row = jnp.logical_not(p_row)

        e = jnp.exp(row)
        sum_p = jnp.sum(jnp.where(p_row, e, 0.0), axis=1, keepdims=True)   # (1, 1)
        inv_sum_p = pl.reciprocal(sum_p, approx=False)                     # one scalar recip
        n_cnt = jnp.sum(jnp.where(n_row, 1.0, 0.0), axis=1, keepdims=True)
        terms = jnp.log(e * inv_sum_p + eps)                               # (1, B_r)
        num = jnp.sum(jnp.where(n_row, terms, 0.0), axis=1, keepdims=True)

        loss = (-num / (n_cnt + 1.0)) / jnp.float32(batch_size)
        out_ref[...] = loss.astype(out_ref.dtype)


def _pick_feature_tile(d, target=512):
    """Largest multiple of 128 <= target that divides d, else the full d."""
    if d <= target or d % 128 != 0:
        return d
    for t in range(target, 127, -128):
        if d % t == 0:
            return t
    return d


def contrastive_unlearn_loss(h_f, labels_f, h_r, labels_r,
                             temperature=0.1, eps=1e-9):
    # `temperature` (tau) is stored by the torch module but never used in forward.
    del temperature
    b_f, d = h_f.shape
    b_r = h_r.shape[0]

    # Only row i = b_f - 1 contributes -> slice before the call; cheap XLA slice,
    # saves a factor of B in h_f HBM traffic.
    hf_row = h_f[b_f - 1:b_f, :]                                    # (1, D), native dtype
    lf_last = labels_f.reshape(-1)[b_f - 1:b_f].astype(jnp.int32)   # (1,) -> SMEM scalar
    lr = labels_r.reshape(1, b_r).astype(jnp.int32)                 # (1, B_r)

    tk = _pick_feature_tile(d)
    nk = d // tk

    grid_spec = pltpu.PrefetchScalarGridSpec(
        num_scalar_prefetch=1,
        grid=(nk,),
        in_specs=[
            pl.BlockSpec((1, tk), lambda k, lf: (0, k)),            # h_f row B-1
            pl.BlockSpec((b_r, tk), lambda k, lf: (0, k)),          # h_r feature slab
            pl.BlockSpec((1, b_r), lambda k, lf: (0, 0)),           # labels_r row
        ],
        out_specs=pl.BlockSpec((1, 1), lambda k, lf: (0, 0)),
        scratch_shapes=[
            pltpu.VMEM((1, b_r), jnp.float32),                      # dot-row accumulator
            pltpu.VMEM((1, 1), jnp.float32),                        # |h_f[B-1]|^2
            pltpu.VMEM((1, b_r), jnp.float32),                      # per-column |h_r|^2
        ],
    )

    out = pl.pallas_call(
        functools.partial(_contrastive_unlearn_kernel, eps=eps, batch_size=b_f),
        out_shape=jax.ShapeDtypeStruct((1, 1), jnp.float32),
        grid_spec=grid_spec,
        compiler_params=pltpu.CompilerParams(
            dimension_semantics=("arbitrary",),      # feature dim is a reduction
            vmem_limit_bytes=32 * 1024 * 1024,       # safe on v5e/v6e/v7x scoped VMEM
        ),
    )(lf_last, hf_row, h_r, lr)
    return out[0, 0]


def _reference(h_f, labels_f, h_r, labels_r, eps=1e-9):
    # Plain-JAX reproduction of the torch forward (only row B-1 contributes
    # because the reference loop overwrites `loss` each iteration).
    B = h_f.shape[0]
    i = B - 1
    dots = jnp.sum(h_f[i][None, :] * h_r, axis=1)
    w1 = jnp.sum(h_f[i] * h_f[i])
    w2 = jnp.sum(h_r * h_r, axis=1)
    denom = jnp.sqrt(jnp.maximum(w1 * w2, _COS_EPS ** 2))
    row = dots / denom
    p = labels_f[i] == labels_r
    n = jnp.logical_not(p)
    e = jnp.exp(row)
    sum_p = jnp.sum(jnp.where(p, e, 0.0))
    n_cnt = jnp.sum(n.astype(jnp.float32))
    terms = jnp.log(e / sum_p + eps)
    loss = -jnp.sum(jnp.where(n, terms, 0.0)) / (n_cnt + 1.0)
    return loss / B


if __name__ == "__main__":
    key = jax.random.PRNGKey(0)
    k1, k2, k3, k4 = jax.random.split(key, 4)
    B, D = 8, 32
    h_f = jax.random.normal(k1, (B, D), dtype=jnp.float32)
    h_r = jax.random.normal(k2, (B, D), dtype=jnp.float32)
    labels_f = jax.random.randint(k3, (B,), 0, 3, dtype=jnp.int32)
    labels_r = jax.random.randint(k4, (B,), 0, 3, dtype=jnp.int32)
    # Guarantee at least one positive for the (only contributing) last row so
    # the reference value is finite and deterministic.
    labels_r = labels_r.at[0].set(labels_f[B - 1])

    loss = contrastive_unlearn_loss(h_f, labels_f, h_r, labels_r)
    loss = jax.block_until_ready(loss)

    ref = _reference(h_f, labels_f, h_r, labels_r)
    assert abs(float(loss) - float(ref)) <= 1e-4 + 1e-4 * abs(float(ref)), (
        float(loss), float(ref))

    print("KERNEL_OK")
</pallas_src>

<mosaic_0001>
module attributes {stable_mosaic.version = 11 : i64} {
  func.func @_contrastive_unlearn_kernel(%arg0: i32, %arg1: memref<1xi32, #tpu.memory_space<smem>>, %arg2: memref<1x32xf32, #tpu.memory_space<vmem>>, %arg3: memref<8x32xf32, #tpu.memory_space<vmem>>, %arg4: memref<1x8xi32, #tpu.memory_space<vmem>>, %arg5: memref<1x1xf32, #tpu.memory_space<vmem>>, %arg6: memref<1x8xf32, #tpu.memory_space<vmem>>, %arg7: memref<1x1xf32, #tpu.memory_space<vmem>>, %arg8: memref<1x8xf32, #tpu.memory_space<vmem>>) attributes {dimension_semantics = [#tpu.dimension_semantics<arbitrary>], iteration_bounds = array<i64: 1>, scalar_prefetch = 1 : i64, scratch_operands = 3 : i64, tpu.core_type = #tpu.core_type<tc>, window_params = [{transform_indices = @transform_0, window_bounds = array<i64: 1, 32>}, {transform_indices = @transform_1, window_bounds = array<i64: 8, 32>}, {pipeline_mode = #tpu.pipeline_mode<synchronous>, transform_indices = @transform_2, window_bounds = array<i64: 1, 8>}, {pipeline_mode = #tpu.pipeline_mode<synchronous>, transform_indices = @transform_3, window_bounds = array<i64: 1, 1>}]} {
    %c0_i32 = arith.constant 0 : i32
    %0 = arith.cmpi eq, %arg0, %c0_i32 : i32
    %1 = arith.extui %0 : i1 to i32
    %c0_i32_0 = arith.constant 0 : i32
    %2 = arith.cmpi ne, %1, %c0_i32_0 : i32
    scf.if %2 {
      %cst_21 = arith.constant 0.000000e+00 : f32
      %24 = vector.broadcast %cst_21 : f32 to vector<1x8xf32>
      %c0_22 = arith.constant 0 : index
      %c0_23 = arith.constant 0 : index
      %25 = vector.load %arg6[%c0_22, %c0_23] : memref<1x8xf32, #tpu.memory_space<vmem>>, vector<1x8xf32>
      tpu.vector_store %arg6[%c0_22, %c0_23], %24 {strides = array<i32>} : memref<1x8xf32, #tpu.memory_space<vmem>>, vector<1x8xf32>,
      %cst_24 = arith.constant 0.000000e+00 : f32
      %26 = vector.broadcast %cst_24 : f32 to vector<1x1xf32>
      %c0_25 = arith.constant 0 : index
      %c0_26 = arith.constant 0 : index
      %27 = vector.load %arg7[%c0_25, %c0_26] : memref<1x1xf32, #tpu.memory_space<vmem>>, vector<1x1xf32>
      tpu.vector_store %arg7[%c0_25, %c0_26], %26 {strides = array<i32>} : memref<1x1xf32, #tpu.memory_space<vmem>>, vector<1x1xf32>,
      %cst_27 = arith.constant 0.000000e+00 : f32
      %28 = vector.broadcast %cst_27 : f32 to vector<1x8xf32>
      %c0_28 = arith.constant 0 : index
      %c0_29 = arith.constant 0 : index
      %29 = vector.load %arg8[%c0_28, %c0_29] : memref<1x8xf32, #tpu.memory_space<vmem>>, vector<1x8xf32>
      tpu.vector_store %arg8[%c0_28, %c0_29], %28 {strides = array<i32>} : memref<1x8xf32, #tpu.memory_space<vmem>>, vector<1x8xf32>,
    } else {
    }
    %c0 = arith.constant 0 : index
    %c0_1 = arith.constant 0 : index
    %3 = vector.load %arg2[%c0, %c0_1] : memref<1x32xf32, #tpu.memory_space<vmem>>, vector<1x32xf32>
    %c0_2 = arith.constant 0 : index
    %c0_3 = arith.constant 0 : index
    %4 = vector.load %arg3[%c0_2, %c0_3] : memref<8x32xf32, #tpu.memory_space<vmem>>, vector<8x32xf32>
    %c0_4 = arith.constant 0 : index
    %c0_5 = arith.constant 0 : index
    %5 = vector.load %arg6[%c0_4, %c0_5] : memref<1x8xf32, #tpu.memory_space<vmem>>, vector<1x8xf32>
    %cst = arith.constant dense<0.000000e+00> : vector<1x8xf32>
    %6 = tpu.matmul %3, %4, %cst {dimension_numbers = #tpu.dot_dimension_numbers<[1], [1], [0], [0], [0, 0, 1, 0], [], []>, precision = #tpu.contract_precision<fp32>} : vector<1x32xf32>, vector<8x32xf32>, vector<1x8xf32> -> vector<1x8xf32>
    %7 = arith.addf %5, %6 : vector<1x8xf32>
    %c0_6 = arith.constant 0 : index
    %c0_7 = arith.constant 0 : index
    %8 = vector.load %arg6[%c0_6, %c0_7] : memref<1x8xf32, #tpu.memory_space<vmem>>, vector<1x8xf32>
    tpu.vector_store %arg6[%c0_6, %c0_7], %7 {strides = array<i32>} : memref<1x8xf32, #tpu.memory_space<vmem>>, vector<1x8xf32>,
    %c0_8 = arith.constant 0 : index
    %c0_9 = arith.constant 0 : index
    %9 = vector.load %arg7[%c0_8, %c0_9] : memref<1x1xf32, #tpu.memory_space<vmem>>, vector<1x1xf32>
    %10 = arith.mulf %3, %3 : vector<1x32xf32>
    %cst_10 = arith.constant dense<0.000000e+00> : vector<1xf32>
    %11 = vector.multi_reduction <add>, %10, %cst_10 [1] : vector<1x32xf32> to vector<1xf32>
    %12 = vector.shape_cast %11 : vector<1xf32> to vector<1x1xf32>
    %13 = arith.addf %9, %12 : vector<1x1xf32>
    %c0_11 = arith.constant 0 : index
    %c0_12 = arith.constant 0 : index
    %14 = vector.load %arg7[%c0_11, %c0_12] : memref<1x1xf32, #tpu.memory_space<vmem>>, vector<1x1xf32>
    tpu.vector_store %arg7[%c0_11, %c0_12], %13 {strides = array<i32>} : memref<1x1xf32, #tpu.memory_space<vmem>>, vector<1x1xf32>,
    %cst_13 = arith.constant 1.000000e+00 : f32
    %15 = vector.broadcast %cst_13 : f32 to vector<1x32xf32>
    %c0_14 = arith.constant 0 : index
    %c0_15 = arith.constant 0 : index
    %16 = vector.load %arg8[%c0_14, %c0_15] : memref<1x8xf32, #tpu.memory_space<vmem>>, vector<1x8xf32>
    %17 = arith.mulf %4, %4 : vector<8x32xf32>
    %cst_16 = arith.constant dense<0.000000e+00> : vector<1x8xf32>
    %18 = tpu.matmul %15, %17, %cst_16 {dimension_numbers = #tpu.dot_dimension_numbers<[1], [1], [0], [0], [0, 0, 1, 0], [], []>, precision = #tpu.contract_precision<fp32>} : vector<1x32xf32>, vector<8x32xf32>, vector<1x8xf32> -> vector<1x8xf32>
    %19 = arith.addf %16, %18 : vector<1x8xf32>
    %c0_17 = arith.constant 0 : index
    %c0_18 = arith.constant 0 : index
    %20 = vector.load %arg8[%c0_17, %c0_18] : memref<1x8xf32, #tpu.memory_space<vmem>>, vector<1x8xf32>
    tpu.vector_store %arg8[%c0_17, %c0_18], %19 {strides = array<i32>} : memref<1x8xf32, #tpu.memory_space<vmem>>, vector<1x8xf32>,
    %c0_i32_19 = arith.constant 0 : i32
    %21 = arith.cmpi eq, %arg0, %c0_i32_19 : i32
    %22 = arith.extui %21 : i1 to i32
    %c0_i32_20 = arith.constant 0 : i32
    %23 = arith.cmpi ne, %22, %c0_i32_20 : i32
    scf.if %23 {
      %c0_21 = arith.constant 0 : index
      %24 = memref.load %arg1[%c0_21] : memref<1xi32, #tpu.memory_space<smem>>
      %c0_22 = arith.constant 0 : index
      %c0_23 = arith.constant 0 : index
      %25 = vector.load %arg4[%c0_22, %c0_23] : memref<1x8xi32, #tpu.memory_space<vmem>>, vector<1x8xi32>
      %c0_24 = arith.constant 0 : index
      %c0_25 = arith.constant 0 : index
      %26 = vector.load %arg6[%c0_24, %c0_25] : memref<1x8xf32, #tpu.memory_space<vmem>>, vector<1x8xf32>
      %c0_26 = arith.constant 0 : index
      %c0_27 = arith.constant 0 : index
      %27 = vector.load %arg7[%c0_26, %c0_27] : memref<1x1xf32, #tpu.memory_space<vmem>>, vector<1x1xf32>
      %c0_28 = arith.constant 0 : index
      %c0_29 = arith.constant 0 : index
      %28 = vector.load %arg8[%c0_28, %c0_29] : memref<1x8xf32, #tpu.memory_space<vmem>>, vector<1x8xf32>
      %29 = vector.broadcast %27 : vector<1x1xf32> to vector<1x8xf32>
      %30 = arith.mulf %29, %28 : vector<1x8xf32>
      %cst_30 = arith.constant 1.000000e-16 : f32
      %31 = vector.broadcast %cst_30 : f32 to vector<1x8xf32>
      %32 = arith.maximumf %30, %31 : vector<1x8xf32>
      %33 = math.rsqrt %32 : vector<1x8xf32>
      %34 = arith.mulf %26, %33 : vector<1x8xf32>
      %35 = vector.broadcast %24 : i32 to vector<1x8xi32>
      %36 = arith.cmpi eq, %25, %35 : vector<1x8xi32>
      %cst_31 = arith.constant dense<true> : vector<1x8xi1>
      %37 = arith.xori %36, %cst_31 : vector<1x8xi1>
      %38 = math.exp %34 : vector<1x8xf32>
      %cst_32 = arith.constant 0.000000e+00 : f32
      %39 = vector.broadcast %cst_32 : f32 to vector<1x8xf32>
      %40 = arith.select %36, %38, %39 : vector<1x8xi1>, vector<1x8xf32>
      %cst_33 = arith.constant dense<0.000000e+00> : vector<1xf32>
      %41 = vector.multi_reduction <add>, %40, %cst_33 [1] : vector<1x8xf32> to vector<1xf32>
      %42 = vector.shape_cast %41 : vector<1xf32> to vector<1x1xf32>
      %43 = tpu.reciprocal %42 : vector<1x1xf32> -> vector<1x1xf32>
      %cst_34 = arith.constant 1.000000e+00 : f32
      %cst_35 = arith.constant 0.000000e+00 : f32
      %44 = vector.broadcast %cst_34 : f32 to vector<1x8xf32>
      %45 = vector.broadcast %cst_35 : f32 to vector<1x8xf32>
      %46 = arith.select %37, %44, %45 : vector<1x8xi1>, vector<1x8xf32>
      %cst_36 = arith.constant dense<0.000000e+00> : vector<1xf32>
      %47 = vector.multi_reduction <add>, %46, %cst_36 [1] : vector<1x8xf32> to vector<1xf32>
      %48 = vector.shape_cast %47 : vector<1xf32> to vector<1x1xf32>
      %49 = vector.broadcast %43 : vector<1x1xf32> to vector<1x8xf32>
      %50 = arith.mulf %38, %49 : vector<1x8xf32>
      %cst_37 = arith.constant 9.99999971E-10 : f32
      %51 = vector.broadcast %cst_37 : f32 to vector<1x8xf32>
      %52 = arith.addf %50, %51 : vector<1x8xf32>
      %53 = math.log %52 : vector<1x8xf32>
      %cst_38 = arith.constant 0.000000e+00 : f32
      %54 = vector.broadcast %cst_38 : f32 to vector<1x8xf32>
      %55 = arith.select %37, %53, %54 : vector<1x8xi1>, vector<1x8xf32>
      %cst_39 = arith.constant dense<0.000000e+00> : vector<1xf32>
      %56 = vector.multi_reduction <add>, %55, %cst_39 [1] : vector<1x8xf32> to vector<1xf32>
      %57 = vector.shape_cast %56 : vector<1xf32> to vector<1x1xf32>
      %cst_40 = arith.constant 0.000000e+00 : f32
      %58 = vector.broadcast %cst_40 : f32 to vector<1x1xf32>
      %59 = arith.subf %58, %57 : vector<1x1xf32>
      %cst_41 = arith.constant 1.000000e+00 : f32
      %60 = vector.broadcast %cst_41 : f32 to vector<1x1xf32>
      %61 = arith.addf %48, %60 : vector<1x1xf32>
      %62 = arith.divf %59, %61 : vector<1x1xf32>
      %cst_42 = arith.constant 8.000000e+00 : f32
      %63 = vector.broadcast %cst_42 : f32 to vector<1x1xf32>
      %64 = arith.divf %62, %63 : vector<1x1xf32>
      %c0_43 = arith.constant 0 : index
      %c0_44 = arith.constant 0 : index
      %65 = vector.load %arg5[%c0_43, %c0_44] : memref<1x1xf32, #tpu.memory_space<vmem>>, vector<1x1xf32>
      tpu.vector_store %arg5[%c0_43, %c0_44], %64 {strides = array<i32>} : memref<1x1xf32, #tpu.memory_space<vmem>>, vector<1x1xf32>,
    } else {
    }
    return
  }
  func.func @transform_0(%arg0: i32, %arg1: memref<1xi32, #tpu.memory_space<smem>>) -> (i32, i32) {
    %c0_i32 = arith.constant 0 : i32
    %c0_i32_0 = arith.constant 0 : i32
    return %c0_i32, %arg0 : i32, i32
  }
  func.func @transform_1(%arg0: i32, %arg1: memref<1xi32, #tpu.memory_space<smem>>) -> (i32, i32) {
    %c0_i32 = arith.constant 0 : i32
    %c0_i32_0 = arith.constant 0 : i32
    return %c0_i32, %arg0 : i32, i32
  }
  func.func @transform_2(%arg0: i32, %arg1: memref<1xi32, #tpu.memory_space<smem>>) -> (i32, i32) {
    %c0_i32 = arith.constant 0 : i32
    %c0_i32_0 = arith.constant 0 : i32
    %c0_i32_1 = arith.constant 0 : i32
    return %c0_i32, %c0_i32_0 : i32, i32
  }
  func.func @transform_3(%arg0: i32, %arg1: memref<1xi32, #tpu.memory_space<smem>>) -> (i32, i32) {
    %c0_i32 = arith.constant 0 : i32
    %c0_i32_0 = arith.constant 0 : i32
    %c0_i32_1 = arith.constant 0 : i32
    return %c0_i32, %c0_i32_0 : i32, i32
  }
}

</mosaic_0001>

<bundles_post_ra>
// kernel: tpu_custom_call.1
= control target key start
LH: loop header
LB: loop body
LE: loop exit
PB: predicated region body
PF: predicated region fallthrough
CT: control target
= control target key end

     0   :  { %10 = vsyncpa [#allocation8], 0  ;;  %s620_s0 = inlined_call_operand.<no memory space> [shape: s32[1], index: 0, kind: input, shape index: {}]   ;;  %s621_s1 = inlined_call_operand.vmem [shape: f32[1,32], index: 1, kind: input, shape index: {}]   ;;  %s622_s2 = inlined_call_operand.hbm [shape: f32[8,32], index: 2, kind: input, shape index: {}]   ;;  %s623_s3 = inlined_call_operand.vmem [shape: s32[1,8], index: 3, kind: input, shape index: {}]   ;;  %s624_s4 = inlined_call_operand.hbm [shape: f32[1,1], index: 4, kind: output, shape index: {}]  }
   0x1   :  { %11 = vsyncpa [#allocation9], 0  ;;  %s19_s17 = sshll.u32 %s622_s2, 4  ;;  %s544_s18 = smov [#allocation7]   ;;  %s20_s17 = int_to_ptr.hbm [resolvable:$true] %s19_s17 }
   0x2   :  { %s21_s19 = sshll.u32 %s544_s18, 4  ;;  %s22_s19 = int_to_ptr.vmem [resolvable:$true] %s21_s19 }
   0x3   :  { %24 = dma.hbm_to_vmem [thread:$0]  %s20_s17, 128, %s22_s19, [#allocation8]  }
   0x4   :  { %540 = dma.done.wait [#allocation8], 128  }
   0x5   :  { %541 = vsyncadd [#allocation8], 4294967168  ;;  %v545_v0 = vmov 0   ;;  %vm43_vm0 = vcmask 261120   ;;  %vm37_vm1 = vcmask 0   ;;  %vm201_vm2 = vcmask 253952  }
   0x6   :  { %479 = vset.pattern.permute.xlu0 %v545_v0  ;;  %v211_v1 = vsel %vm43_vm0, 1.0, %v545_v0  ;;  %v40_v2 = vld [vmem:[%s621_s1] sm:$0x1]  ;;  %v41_v3 = vld [vmem:[#allocation7] sm:$0xff]  ;;  %v546_v5 = vmov 0.0   ;;  %v547_v30 = vmov 1.0  }
   0x7   :  { %v234_v4 = vsub.f32 %v211_v1, %v211_v1  ;;  %38 = vst.msk [vmem:[#allocation3] sm:$0x1] %vm37_vm1, %v546_v5  ;;  %v200_v6 = vmul.f32 %v40_v2, %v40_v2  ;;  %v45_v7 = vsel %vm43_vm0, %v40_v2, 0  ;;  %v48_v8 = vsel %vm43_vm0, %v41_v3, 0  ;;  %s459_s26 = sshll.u32 %s624_s4, 4  ;;  %s460_s26 = int_to_ptr.hbm [resolvable:$true] %s459_s26 }
   0x8   :  { %v209_v9 = vmul.f32 %v41_v3, %v41_v3  ;;  %v67_v10 = vand.u32 4294901760, %v45_v7  ;;  %v65_v11 = vand.u32 4294901760, %v48_v8  ;;  %vm35_vm3 = vcmask 57344  }
   0x9   :  { %v202_v12 = vsel %vm201_vm2, %v200_v6, 0.0  ;;  %v235_v17 = vand.u32 4294901760, %v234_v4  ;;  %36 = vst.msk [vmem:[#allocation2] sm:$0x1] %vm35_vm3, %v546_v5  ;;  %vm548_vm8 = vmmov 1  }
   0xa   :  { %v214_v13 = vsel %vm43_vm0, %v209_v9, 0  ;;  %203 = vadd.xlane.f32.xlu0 %v202_v12  ;;  %v92_v14 = vsub.f32 %v48_v8, %v65_v11  ;;  %66 = vmatpush.xpose.msra.mxu0 %v65_v11  ;;  %v68_v15 = vsub.f32 %v45_v7, %v67_v10  ;;  %39 = vst.msk [vmem:[#allocation4] sm:$0x1] %vm35_vm3, %v546_v5 }
   0xb   :  { %v231_v16 = vand.u32 4294901760, %v214_v13  ;;  %142 = vmatpush.xpose.msra.mxu3 %v65_v11  ;;  %v236_v24 = vsub.f32 %v234_v4, %v235_v17 }
   0xc   :  { %119 = vmatpush.xpose.msra.mxu2 %v92_v14  ;;  %v93_v18 = vand.u32 4294901760, %v92_v14  ;;  %v69_v19 = vand.u32 4294901760, %v68_v15 }
   0xd   :  { %v258_v20 = vsub.f32 %v214_v13, %v231_v16  ;;  %v237_v29 = vand.u32 4294901760, %v236_v24  ;;  %v368_v13 = vld [vmem:[%s623_s3] sm:$0x1] }
   0xe   :  { %v94_v21 = vsub.f32 %v92_v14, %v93_v18  ;;  %v70_v22 = vsub.f32 %v68_v15, %v69_v19  ;;  %146 = vmatmul.f32.vlgmr.msra.gmra.mxu3 %v69_v19  ;;  %168 = vmatpush.xpose.msrb.mxu0 %v93_v18  ;;  %v199_v31 = vld [vmem:[#allocation3] sm:$0x1]  ;;  %v391_v14 = vstv %s620_s0  ;;  %s550_s0 = smov [#allocation10]  }
   0xf   :  { %v259_v23 = vand.u32 4294901760, %v258_v20  ;;  %122 = vmatmul.f32.vlgmr.msra.gmra.mxu2 %v68_v15  ;;  %vm392_vm7 = vcmp.eq.s32.totalorder %v368_v13, %v391_v14  ;;  %s457_s3 = sshll.u32 %s550_s0, 4  ;;  %s458_s3 = int_to_ptr.vmem [resolvable:$true] %s457_s3 }
  0x10   :  { %232 = vmatpush.xpose.msrb.mxu2 %v231_v16  ;;  %v95_v25 = vand.u32 4294901760, %v94_v21  ;;  %v71_v26 = vand.u32 4294901760, %v70_v22  ;;  %v42_v44 = vld [vmem:[#allocation2] sm:$0x1]  ;;  %vm605_vm9 = vmxor %vm392_vm7, %vm548_vm8 }
  0x11   :  { %v260_v27 = vsub.f32 %v258_v20, %v259_v23  ;;  %v208_v58 = vld [vmem:[#allocation4] sm:$0x1]  ;;  %v414_v19 = vsel %vm605_vm9, 1.0, %v546_v5 }
  0x12   :  { %96 = vmatpush.xpose.msra.mxu1 %v95_v25  ;;  %72 = vmatmul.f32.vlgmr.msra.gmra.mxu0 %v71_v26 }
  0x13   :  { %v261_v28 = vand.u32 4294901760, %v260_v27  ;;  %285 = vmatpush.xpose.msra.mxu0 %v258_v20  ;;  %v415_v20 = vsel %vm35_vm3, %v414_v19, 0.0 }
  0x14   :  { %334 = vmatpush.xpose.msra.mxu2 %v259_v23 }
  0x15   :  { %262 = vmatpush.xpose.msrb.mxu3 %v261_v28  ;;  %98 = vmatmul.f32.vlgmr.msra.gmra.mxu1 %v67_v10 }
  0x16   :  { %190 = vmatpush.xpose.msrb.mxu1 %v65_v11 }
  0x17   :  { %238 = vmatmul.f32.vlgmr.msrb.gmra.mxu2 %v237_v29 }
  0x18   :  { %469 = vmatmul.msk.f32.vlgmr.msrb.gmra.mxu3 %vm43_vm0, %v547_v30 }
  0x19   :  { %356 = vmatpush.xpose.msra.mxu3 %v231_v16 }
  0x1a   :  { %308 = vmatpush.xpose.msra.mxu1 %v231_v16  ;;  %170 = vmatmul.f32.vlgmr.msrb.gmra.mxu0 %v67_v10 }
  0x1d   :  { %192 = vmatmul.f32.vlgmr.msrb.gmra.mxu1 %v67_v10 }
  0x1f   :  { %470 = vmatmul.msk.f32.vlgmr.msra.gmra.mxu2 %vm43_vm0, %v547_v30 }
  0x20   :  { %471 = vmatmul.msk.f32.vlgmr.msra.gmra.mxu3 %vm43_vm0, %v547_v30 }
  0x22   :  { %288 = vmatmul.f32.vlgmr.msra.gmra.mxu0 %v234_v4 }
  0x25   :  { %312 = vmatmul.f32.vlgmr.msra.gmra.mxu1 %v235_v17 }
  0x7d   :  { %v204_v32 = vpop.xlane.xlu0 %203 }
  0x7e   :  { %v205_v33 = vadd.f32 %v204_v32, %v199_v31 }
  0x80   :  { %207 = vst.msk [vmem:[#allocation3] sm:$0x1] %vm37_vm1, %v205_v33 }
  0x87   :  { %v370_v34 = vld [vmem:[#allocation3] sm:$0x1] }
  0x88   :  { %374 = vperm.xlu0 %479, %v370_v34  }
  0x8f   :  { %v73_v35 = vpop.f32.mrf.mxu0 }
  0x91   :  { %v147_v36 = vpop.f32.mrf.mxu3 }
  0x92   :  { %v99_v37 = vpop.f32.mrf.mxu1  ;;  %v123_v38 = vpop.f32.mrf.mxu2 }
  0x93   :  { %v100_v39 = vadd.f32 %v99_v37, %v73_v35 }
  0x95   :  { %v124_v40 = vadd.f32 %v123_v38, %v100_v39  ;;  %v549_v39 = vmov 8.0  }
  0x97   :  { %v148_v41 = vadd.f32 %v147_v36, %v124_v40  ;;  %v171_v42 = vpop.f32.mrf.mxu0 }
  0x99   :  { %v172_v43 = vadd.f32 %v171_v42, %v148_v41 }
  0x9a   :  { %v193_v45 = vpop.f32.mrf.mxu1  ;;  %v239_v46 = vpop.f32.mrf.mxu2 }
  0x9b   :  { %v194_v47 = vadd.f32 %v193_v45, %v172_v43  ;;  %v265_v48 = vpop.f32.mrf.mxu3 }
  0x9c   :  { %v266_v49 = vadd.f32 %v265_v48, %v239_v46 }
  0x9d   :  { %v196_v50 = vadd.f32 %v194_v47, %v42_v44 }
  0x9f   :  { %198 = vst.msk [vmem:[#allocation2] sm:$0x1] %vm35_vm3, %v196_v50  ;;  %v289_v51 = vpop.f32.mrf.mxu0 }
  0xa0   :  { %v290_v52 = vadd.f32 %v289_v51, %v266_v49 }
  0xa2   :  { %v313_v53 = vpop.f32.mrf.mxu1  ;;  %v337_v54 = vpop.f32.mrf.mxu2 }
  0xa3   :  { %v314_v55 = vadd.f32 %v313_v53, %v290_v52  ;;  %v359_v56 = vpop.f32.mrf.mxu3 }
  0xa5   :  { %v338_v57 = vadd.f32 %v337_v54, %v314_v55 }
  0xa6   :  { %v369_v9 = vld [vmem:[#allocation2] sm:$0x1] }
  0xa7   :  { %v360_v59 = vadd.f32 %v359_v56, %v338_v57 }
  0xa9   :  { %v362_v60 = vadd.f32 %v360_v59, %v208_v58 }
  0xab   :  { %363 = vst.msk [vmem:[#allocation4] sm:$0x1] %vm35_vm3, %v362_v60 }
  0xb2   :  { %v371_v63 = vld [vmem:[#allocation4] sm:$0x1] }
  0xfa   :  { %v375_v61 = vpop.permute.xlu0 %374 }
  0xfb   :  { %v377_v62 = vperm.slane %v375_v61, 0 }
  0xfd   :  { %v378_v0 = vmul.f32 %v377_v62, %v371_v63 }
  0xff   :  { %v379_v1 = vmax.f32 %v378_v0, 1e-16 }
 0x101   :  { %480 = vrsqrt.f32 %v379_v1  ;;  %vm386_vm5 = vweird.f32 %v379_v1 }
 0x107   :  { %v481_v2 = vpop.eup %480 }
 0x108   :  { %v381_v3 = vmul.f32 %v481_v2, %v379_v1  ;;  %vm387_vm4 = vweird.f32 %v481_v2 }
 0x109   :  { %vm388_vm6 = vmor %vm386_vm5, %vm387_vm4 }
 0x10a   :  { %v382_v4 = vmul.f32 %v481_v2, %v381_v3 }
 0x10c   :  { %v383_v6 = vmul.f32 0.5, %v382_v4 }
 0x10e   :  { %v384_v7 = vsub.f32 1.5, %v383_v6 }
 0x110   :  { %v385_v8 = vmul.f32 %v481_v2, %v384_v7 }
 0x112   :  { %v389_v10 = vsel %vm388_vm6, %v481_v2, %v385_v8 }
 0x113   :  { %v390_v11 = vmul.f32 %v389_v10, %v369_v9 }
 0x115   :  { %v394_v12 = vmul.f32 1.442695, %v390_v11 }
 0x117   :  { %482 = vpow2.f32 %v394_v12 }
 0x11d   :  { %v483_v15 = vpop.eup %482 }
 0x11e   :  { %v396_v16 = vsel %vm392_vm7, %v483_v15, 0.0 }
 0x11f   :  { %v397_v17 = vsel %vm35_vm3, %v396_v16, 0.0 }
 0x120   :  { %398 = vadd.xlane.f32.xlu1 %v397_v17 }
 0x128   :  { %416 = vadd.xlane.f32.xlu1 %v415_v20 }
 0x193   :  { %v399_v21 = vpop.xlane.xlu1 %398 }
 0x194   :  { %484 = vrcp.f32 %v399_v21  ;;  %v411_v25 = vand.u32 2147483648, %v399_v21  ;;  %v409_v27 = vand.u32 2147483647, %v399_v21  ;;  %vm405_vm11 = vweird.f32 %v399_v21 }
 0x196   :  { %v412_v29 = vor.u32 1.1754944e-38, %v411_v25  ;;  %vm410_vm13 = vcmp.eq.f32.partialorder %v409_v27, 8.507059e+37 }
 0x19a   :  { %v485_v22 = vpop.eup %484 }
 0x19b   :  { %v401_v23 = vmul.f32 %v485_v22, %v399_v21  ;;  %vm406_vm10 = vweird.f32 %v485_v22  ;;  %v417_v37 = vpop.xlane.xlu1 %416 }
 0x19c   :  { %vm407_vm12 = vmor %vm405_vm11, %vm406_vm10  ;;  %v427_v38 = vadd.f32 1.0, %v417_v37 }
 0x19d   :  { %v402_v24 = vsub.f32 1.0, %v401_v23 }
 0x19e   :  { %vm433_vm14 = vweird.f32 %v427_v38  ;;  %v439_v48 = vand.u32 2147483648, %v427_v38  ;;  %v437_v50 = vand.u32 2147483647, %v427_v38 }
 0x19f   :  { %v403_v26 = vmul.f32 %v485_v22, %v402_v24 }
 0x1a0   :  { %v440_v52 = vor.u32 1.1754944e-38, %v439_v48 }
 0x1a1   :  { %v404_v28 = vadd.f32 %v485_v22, %v403_v26 }
 0x1a3   :  { %v408_v30 = vsel %vm407_vm12, %v485_v22, %v404_v28 }
 0x1a4   :  { %v413_v31 = vsel %vm410_vm13, %v412_v29, %v408_v30 }
 0x1a5   :  { %v418_v5 = vmul.f32 %v483_v15, %v413_v31 }
 0x1a7   :  { %v419_v32 = vadd.f32 1e-09, %v418_v5 }
 0x1a9   :  { %486 = vlog2.f32 %v419_v32 }
 0x1aa   :  { %488 = vrcp.f32 %v427_v38 }
 0x1ab   :  { %490 = vrcp.f32 %v549_v39 }
 0x1af   :  { %v487_v33 = vpop.eup %486 }
 0x1b0   :  { %v421_v34 = vmul.f32 0.6931472, %v487_v33  ;;  %v489_v40 = vpop.eup %488 }
 0x1b1   :  { %v491_v41 = vpop.eup %490  ;;  %v429_v42 = vmul.f32 %v489_v40, %v427_v38  ;;  %vm434_vm15 = vweird.f32 %v489_v40 }
 0x1b2   :  { %v422_v35 = vsel %vm605_vm9, %v421_v34, 0.0  ;;  %v444_v43 = vmul.f32 8.0, %v491_v41  ;;  %vm435_vm0 = vmor %vm433_vm14, %vm434_vm15  ;;  %vm448_vm2 = vweird.f32 %v491_v41 }
 0x1b3   :  { %v423_v36 = vsel %vm35_vm3, %v422_v35, 0.0  ;;  %v430_v44 = vsub.f32 1.0, %v429_v42  ;;  %vm438_vm3 = vcmp.eq.f32.partialorder %v437_v50, 8.507059e+37 }
 0x1b4   :  { %424 = vadd.xlane.f32.xlu2 %v423_v36  ;;  %v445_v45 = vsub.f32 1.0, %v444_v43 }
 0x1b5   :  { %v431_v46 = vmul.f32 %v489_v40, %v430_v44 }
 0x1b6   :  { %v446_v47 = vmul.f32 %v491_v41, %v445_v45 }
 0x1b7   :  { %v432_v49 = vadd.f32 %v489_v40, %v431_v46 }
 0x1b8   :  { %v447_v51 = vadd.f32 %v491_v41, %v446_v47 }
 0x1b9   :  { %v436_v53 = vsel %vm435_vm0, %v489_v40, %v432_v49 }
 0x1ba   :  { %v449_v56 = vsel %vm448_vm2, %v491_v41, %v447_v51  ;;  %v441_v57 = vsel %vm438_vm3, %v440_v52, %v436_v53 }
 0x227   :  { %v425_v54 = vpop.xlane.xlu2 %424 }
 0x228   :  { %v426_v55 = vsub.f32 0.0, %v425_v54 }
 0x22a   :  { %v442_v58 = vmul.f32 %v441_v57, %v426_v55 }
 0x22c   :  { %v450_v59 = vmul.f32 %v449_v56, %v442_v58 }
 0x22e   :  { %451 = vst.msk [vmem:[#allocation10] sm:$0x1] %vm37_vm1, %v450_v59 }
 0x22f   :  { %462 = dma.vmem_to_hbm [thread:$0]  %s458_s3, 16, %s460_s26, [#allocation9]  }
 0x230   :  { %542 = dma.done.wait [#allocation9], 16  }
 0x231   :  { %543 = vsyncadd [#allocation9], 4294967280 }
 0x232   :  { %467 = vsyncpa [#allocation8], 1 }
 0x233   :  { %468 = vsyncpa [#allocation9], 1 }

</bundles_post_ra>
